<compile_context>
chip_gen: v5e
topology: v5e:2x2
jax: 0.10.0
libtpu: 0.0.40
codegen_flags: <defaults>
</compile_context>

<pallas_src>
import functools

import jax
import jax.numpy as jnp
from jax.experimental import pallas as pl
from jax.experimental.pallas import tpu as pltpu  # noqa: F401  (TPU backend)

LANE = 128      # lane width  -> pad feature dims to this
SUBLANE = 8     # sublane     -> pad batch dim to this


def _round_up(n, m):
    return ((n + m - 1) // m) * m


def _fused_mlp_kernel(*refs, num_layers):
    """Single-block fused MLP: relu(x@W1+b1) -> ... -> sigmoid(h@Wn+bn).

    refs = (x_ref, w1_ref, b1_ref, ..., wN_ref, bN_ref, o_ref).
    Weights arrive pre-transposed as [in_padded, out_padded]; biases as
    [1, out_padded]. Everything lives in VMEM; intermediates stay in vregs.
    """
    x_ref = refs[0]
    o_ref = refs[-1]

    h = x_ref[...]                                   # [Bp, Fp] f32
    for i in range(num_layers):
        w = refs[1 + 2 * i][...]                     # [Fin_p, Fout_p]
        b = refs[2 + 2 * i][...]                     # [1, Fout_p]
        y = jnp.dot(h, w, preferred_element_type=jnp.float32) + b
        if i < num_layers - 1:
            h = jnp.maximum(y, 0.0)                  # ReLU (VPU)
        else:
            h = jax.nn.sigmoid(y)                    # Sigmoid (EUP, stable)
    o_ref[...] = h.astype(o_ref.dtype)


def _fused_forward_padded(x_pad, flat_params):
    """pallas_call over already lane/sublane-padded operands."""
    num_layers = len(flat_params) // 2
    batch_p = x_pad.shape[0]
    out_p = flat_params[-1].shape[-1]

    kernel = functools.partial(_fused_mlp_kernel, num_layers=num_layers)

    in_specs = [pl.BlockSpec(x_pad.shape, lambda: (0, 0))]
    for a in flat_params:
        in_specs.append(pl.BlockSpec(a.shape, lambda: (0, 0)))

    return pl.pallas_call(
        kernel,
        out_shape=jax.ShapeDtypeStruct((batch_p, out_p), jnp.float32),
        in_specs=in_specs,
        out_specs=pl.BlockSpec((batch_p, out_p), lambda: (0, 0)),
    )(x_pad, *flat_params)


def init_mlp_params(key, in_size, hidden_sizes, out_size):
    """Deterministic init mirroring nn.Linear shapes: W [out, in], b [out]."""
    sizes = [in_size] + list(hidden_sizes) + [out_size]
    params = []
    for i in range(len(sizes) - 1):
        fan_in, fan_out = sizes[i], sizes[i + 1]
        key, kw, kb = jax.random.split(key, 3)
        bound = 1.0 / jnp.sqrt(fan_in)
        w = jax.random.uniform(kw, (fan_out, fan_in), jnp.float32, -bound, bound)
        b = jax.random.uniform(kb, (fan_out,), jnp.float32, -bound, bound)
        params.append((w, b))
    return params


def pad_params(params):
    """One-time layout plumbing: transpose W to [in, out] and zero-pad both
    feature dims up to multiples of 128. Zero padding keeps the math exact
    (padded inputs/rows contribute 0)."""
    padded = []
    for w, b in params:
        out_f, in_f = w.shape
        in_p = _round_up(in_f, LANE)
        out_p = _round_up(out_f, LANE)
        wt = jnp.zeros((in_p, out_p), jnp.float32).at[:in_f, :out_f].set(w.T)
        bp = jnp.zeros((1, out_p), jnp.float32).at[0, :out_f].set(b)
        padded.append((wt, bp))
    return padded


@functools.partial(jax.jit, static_argnames=("out_size",))
def mlp_forward(x, padded_params, out_size):
    """Fused forward: pad x -> single Pallas kernel -> slice back down."""
    batch, in_f = x.shape
    in_p = padded_params[0][0].shape[0]
    batch_p = _round_up(batch, SUBLANE)

    x_pad = jnp.zeros((batch_p, in_p), jnp.float32).at[:batch, :in_f].set(x)
    flat = [a for wb in padded_params for a in wb]

    out_pad = _fused_forward_padded(x_pad, flat)
    return out_pad[:batch, :out_size]


if __name__ == "__main__":
    in_size, hidden_sizes, out_size = 16, [32, 32], 8
    batch = 8

    key = jax.random.PRNGKey(0)
    key, kx = jax.random.split(key)
    x = jax.random.normal(kx, (batch, in_size), jnp.float32)

    params = init_mlp_params(key, in_size, hidden_sizes, out_size)
    padded_params = pad_params(params)

    out = mlp_forward(x, padded_params, out_size)
    jax.block_until_ready(out)

    # Pure-JAX reference (same math, no padding) for a correctness check.
    h = x
    for i, (w, b) in enumerate(params):
        y = h @ w.T + b
        h = jax.nn.sigmoid(y) if i == len(params) - 1 else jnp.maximum(y, 0.0)
    ref = h

    assert out.shape == (batch, out_size)
    assert bool(jnp.all(jnp.abs(out - ref) < 1e-5))
    assert bool(jnp.all((out > 0.0) & (out < 1.0)))  # sigmoid range sanity

    print("KERNEL_OK")
</pallas_src>

<mosaic_0001>
module attributes {stable_mosaic.version = 11 : i64} {
  func.func @_fused_mlp_kernel(%arg0: memref<8x128xf32, #tpu.memory_space<vmem>>, %arg1: memref<128x128xf32, #tpu.memory_space<vmem>>, %arg2: memref<1x128xf32, #tpu.memory_space<vmem>>, %arg3: memref<128x128xf32, #tpu.memory_space<vmem>>, %arg4: memref<1x128xf32, #tpu.memory_space<vmem>>, %arg5: memref<128x128xf32, #tpu.memory_space<vmem>>, %arg6: memref<1x128xf32, #tpu.memory_space<vmem>>, %arg7: memref<8x128xf32, #tpu.memory_space<vmem>>) attributes {dimension_semantics = [], scalar_prefetch = 0 : i64, scratch_operands = 0 : i64, tpu.core_type = #tpu.core_type<tc>} {
    %c0 = arith.constant 0 : index
    %c0_0 = arith.constant 0 : index
    %0 = vector.load %arg0[%c0, %c0_0] : memref<8x128xf32, #tpu.memory_space<vmem>>, vector<8x128xf32>
    %c0_1 = arith.constant 0 : index
    %c0_2 = arith.constant 0 : index
    %1 = vector.load %arg1[%c0_1, %c0_2] : memref<128x128xf32, #tpu.memory_space<vmem>>, vector<128x128xf32>
    %c0_3 = arith.constant 0 : index
    %c0_4 = arith.constant 0 : index
    %2 = vector.load %arg2[%c0_3, %c0_4] : memref<1x128xf32, #tpu.memory_space<vmem>>, vector<1x128xf32>
    %cst = arith.constant dense<0.000000e+00> : vector<8x128xf32>
    %3 = tpu.matmul %0, %1, %cst {dimension_numbers = #tpu.dot_dimension_numbers<[1], [0], [0], [1], [0, 0, 1, 1], [], []>} : vector<8x128xf32>, vector<128x128xf32>, vector<8x128xf32> -> vector<8x128xf32>
    %4 = vector.broadcast %2 : vector<1x128xf32> to vector<8x128xf32>
    %5 = arith.addf %3, %4 : vector<8x128xf32>
    %cst_5 = arith.constant 0.000000e+00 : f32
    %6 = vector.broadcast %cst_5 : f32 to vector<8x128xf32>
    %7 = arith.maximumf %5, %6 : vector<8x128xf32>
    %c0_6 = arith.constant 0 : index
    %c0_7 = arith.constant 0 : index
    %8 = vector.load %arg3[%c0_6, %c0_7] : memref<128x128xf32, #tpu.memory_space<vmem>>, vector<128x128xf32>
    %c0_8 = arith.constant 0 : index
    %c0_9 = arith.constant 0 : index
    %9 = vector.load %arg4[%c0_8, %c0_9] : memref<1x128xf32, #tpu.memory_space<vmem>>, vector<1x128xf32>
    %cst_10 = arith.constant dense<0.000000e+00> : vector<8x128xf32>
    %10 = tpu.matmul %7, %8, %cst_10 {dimension_numbers = #tpu.dot_dimension_numbers<[1], [0], [0], [1], [0, 0, 1, 1], [], []>} : vector<8x128xf32>, vector<128x128xf32>, vector<8x128xf32> -> vector<8x128xf32>
    %11 = vector.broadcast %9 : vector<1x128xf32> to vector<8x128xf32>
    %12 = arith.addf %10, %11 : vector<8x128xf32>
    %cst_11 = arith.constant 0.000000e+00 : f32
    %13 = vector.broadcast %cst_11 : f32 to vector<8x128xf32>
    %14 = arith.maximumf %12, %13 : vector<8x128xf32>
    %c0_12 = arith.constant 0 : index
    %c0_13 = arith.constant 0 : index
    %15 = vector.load %arg5[%c0_12, %c0_13] : memref<128x128xf32, #tpu.memory_space<vmem>>, vector<128x128xf32>
    %c0_14 = arith.constant 0 : index
    %c0_15 = arith.constant 0 : index
    %16 = vector.load %arg6[%c0_14, %c0_15] : memref<1x128xf32, #tpu.memory_space<vmem>>, vector<1x128xf32>
    %cst_16 = arith.constant dense<0.000000e+00> : vector<8x128xf32>
    %17 = tpu.matmul %14, %15, %cst_16 {dimension_numbers = #tpu.dot_dimension_numbers<[1], [0], [0], [1], [0, 0, 1, 1], [], []>} : vector<8x128xf32>, vector<128x128xf32>, vector<8x128xf32> -> vector<8x128xf32>
    %18 = vector.broadcast %16 : vector<1x128xf32> to vector<8x128xf32>
    %19 = arith.addf %17, %18 : vector<8x128xf32>
    %20 = arith.negf %19 : vector<8x128xf32>
    %21 = math.exp %20 : vector<8x128xf32>
    %cst_17 = arith.constant 1.000000e+00 : f32
    %22 = vector.broadcast %cst_17 : f32 to vector<8x128xf32>
    %23 = arith.addf %22, %21 : vector<8x128xf32>
    %24 = arith.divf %22, %23 : vector<8x128xf32>
    %c0_18 = arith.constant 0 : index
    %c0_19 = arith.constant 0 : index
    %25 = vector.load %arg7[%c0_18, %c0_19] : memref<8x128xf32, #tpu.memory_space<vmem>>, vector<8x128xf32>
    tpu.vector_store %arg7[%c0_18, %c0_19], %24 {strides = array<i32>} : memref<8x128xf32, #tpu.memory_space<vmem>>, vector<8x128xf32>,
    return
  }
}

</mosaic_0001>

<bundles_post_ra>
// kernel: mlp_forward.1
= control target key start
LH: loop header
LB: loop body
LE: loop exit
PB: predicated region body
PF: predicated region fallthrough
CT: control target
= control target key end

     0   :  { %12 = vsyncpa [#allocation3], 0  ;;  %s421_s0 = inlined_call_operand.vmem [shape: f32[8,128], index: 0, kind: input, shape index: {}]   ;;  %s422_s1 = inlined_call_operand.hbm [shape: f32[128,128], index: 1, kind: input, shape index: {}]   ;;  %s423_s2 = inlined_call_operand.vmem [shape: f32[1,128], index: 2, kind: input, shape index: {}]   ;;  %s424_s3 = inlined_call_operand.hbm [shape: f32[128,128], index: 3, kind: input, shape index: {}]   ;;  %s425_s4 = inlined_call_operand.vmem [shape: f32[1,128], index: 4, kind: input, shape index: {}]   ;;  %s426_s5 = inlined_call_operand.hbm [shape: f32[128,128], index: 5, kind: input, shape index: {}]   ;;  %s427_s6 = inlined_call_operand.vmem [shape: f32[1,128], index: 6, kind: input, shape index: {}]   ;;  %s428_s7 = inlined_call_operand.hbm [shape: f32[8,128], index: 7, kind: output, shape index: {}]  }
   0x1   :  { %13 = vsyncpa [#allocation6], 0 }
   0x2   :  { %14 = vsyncpa [#allocation4], 0  ;;  %s36_s26 = sshll.u32 %s424_s3, 4  ;;  %s351_s27 = smov [#allocation5]   ;;  %s37_s26 = int_to_ptr.hbm [resolvable:$true] %s36_s26 }
   0x3   :  { %s38_s28 = sshll.u32 %s351_s27, 4  ;;  %s21_s8 = sshll.u32 %s422_s1, 4  ;;  %s39_s28 = int_to_ptr.vmem [resolvable:$true] %s38_s28  ;;  %s22_s8 = int_to_ptr.hbm [resolvable:$true] %s21_s8 }
   0x4   :  { %s352_s9 = smov 128   ;;  %s353_s10 = smov 8  }
   0x5   :  { %44 = dma.hbm_to_vmem [thread:$0]  %s37_s26, 2048, %s39_s28, [#allocation6], %s352_s9, %s352_s9, %s353_s10  }
   0x6   :  { %s354_s11 = smov [#allocation2]   ;;  %s51_s15 = sshll.u32 %s426_s5, 4  ;;  %s52_s15 = int_to_ptr.hbm [resolvable:$true] %s51_s15 }
   0x7   :  { %s23_s12 = sshll.u32 %s354_s11, 4  ;;  %s355_s3 = smov [#allocation7]   ;;  %s24_s12 = int_to_ptr.vmem [resolvable:$true] %s23_s12 }
   0x8   :  { %29 = dma.hbm_to_vmem [thread:$0]  %s22_s8, 2048, %s24_s12, [#allocation3], %s352_s9, %s352_s9, %s353_s10  }
   0x9   :  { %s53_s16 = sshll.u32 %s355_s3, 4  ;;  %s54_s16 = int_to_ptr.vmem [resolvable:$true] %s53_s16 }
   0xa   :  { %59 = dma.hbm_to_vmem [thread:$0]  %s52_s15, 2048, %s54_s16, [#allocation6], %s352_s9, %s352_s9, %s353_s10  }
   0xb   :  { %345 = dma.done.wait [#allocation3], 2048  }
   0xc   :  { %346 = vsyncadd [#allocation3], 4294965248 }
   0xd   :  { %347 = dma.done.wait [#allocation6], 4096  }
   0xe   :  { %348 = vsyncadd [#allocation6], 4294963200  ;;  %v90_v0 = vld [vmem:[#allocation2 + $0x78] sm:$0xff]  ;;  %v89_v1 = vld [vmem:[#allocation2 + $0x70] sm:$0xff] }
   0xf   :  { %95 = vmatpush.msra.mxu0 %v90_v0  ;;  %v88_v2 = vld [vmem:[#allocation2 + $0x68] sm:$0xff]  ;;  %v87_v3 = vld [vmem:[#allocation2 + $0x60] sm:$0xff]  ;;  %v131_v4 = vld [vmem:[#allocation5 + $0x78] sm:$0xff] }
  0x10   :  { %v86_v5 = vld [vmem:[#allocation2 + $0x58] sm:$0xff]  ;;  %136 = vmatpush.msra.mxu1 %v131_v4  ;;  %v130_v6 = vld [vmem:[#allocation5 + $0x70] sm:$0xff]  ;;  %v129_v7 = vld [vmem:[#allocation5 + $0x68] sm:$0xff] }
  0x11   :  { %96 = vmatpush.msra.mxu0 %v89_v1  ;;  %v85_v8 = vld [vmem:[#allocation2 + $0x50] sm:$0xff]  ;;  %v128_v9 = vld [vmem:[#allocation5 + $0x60] sm:$0xff]  ;;  %v84_v10 = vld [vmem:[#allocation2 + $0x48] sm:$0xff] }
  0x12   :  { %137 = vmatpush.msra.mxu1 %v130_v6  ;;  %v127_v11 = vld [vmem:[#allocation5 + $0x58] sm:$0xff]  ;;  %v83_v12 = vld [vmem:[#allocation2 + $0x40] sm:$0xff]  ;;  %v126_v13 = vld [vmem:[#allocation5 + $0x50] sm:$0xff] }
  0x13   :  { %97 = vmatpush.msra.mxu0 %v88_v2  ;;  %v82_v14 = vld [vmem:[#allocation2 + $0x38] sm:$0xff]  ;;  %v125_v15 = vld [vmem:[#allocation5 + $0x48] sm:$0xff]  ;;  %v81_v16 = vld [vmem:[#allocation2 + $0x30] sm:$0xff] }
  0x14   :  { %138 = vmatpush.msra.mxu1 %v129_v7  ;;  %v124_v17 = vld [vmem:[#allocation5 + $0x40] sm:$0xff]  ;;  %v80_v18 = vld [vmem:[#allocation2 + $0x28] sm:$0xff]  ;;  %v123_v19 = vld [vmem:[#allocation5 + $0x38] sm:$0xff] }
  0x15   :  { %98 = vmatpush.msra.mxu0 %v87_v3  ;;  %v79_v20 = vld [vmem:[#allocation2 + $0x20] sm:$0xff]  ;;  %v122_v21 = vld [vmem:[#allocation5 + $0x30] sm:$0xff]  ;;  %v78_v22 = vld [vmem:[#allocation2 + $0x18] sm:$0xff] }
  0x16   :  { %139 = vmatpush.msra.mxu1 %v128_v9  ;;  %v121_v23 = vld [vmem:[#allocation5 + $0x28] sm:$0xff]  ;;  %v77_v24 = vld [vmem:[#allocation2 + $0x10] sm:$0xff]  ;;  %v120_v25 = vld [vmem:[#allocation5 + $0x20] sm:$0xff] }
  0x17   :  { %99 = vmatpush.msra.mxu0 %v86_v5  ;;  %v76_v26 = vld [vmem:[#allocation2 + $0x8] sm:$0xff]  ;;  %v119_v27 = vld [vmem:[#allocation5 + $0x18] sm:$0xff]  ;;  %v75_v28 = vld [vmem:[#allocation2] sm:$0xff] }
  0x18   :  { %140 = vmatpush.msra.mxu1 %v127_v11  ;;  %v74_v29 = vld [vmem:[%s421_s0] sm:$0xff]  ;;  %v118_v30 = vld [vmem:[#allocation5 + $0x10] sm:$0xff]  ;;  %v117_v31 = vld [vmem:[#allocation5 + $0x8] sm:$0xff] }
  0x19   :  { %100 = vmatpush.msra.mxu0 %v85_v8  ;;  %v116_v32 = vld [vmem:[#allocation5] sm:$0xff]  ;;  %v172_v33 = vld [vmem:[#allocation7 + $0x78] sm:$0xff]  ;;  %v171_v34 = vld [vmem:[#allocation7 + $0x70] sm:$0xff] }
  0x1a   :  { %141 = vmatpush.msra.mxu1 %v126_v13  ;;  %177 = vmatpush.msra.mxu2 %v172_v33  ;;  %v170_v35 = vld [vmem:[#allocation7 + $0x68] sm:$0xff]  ;;  %v169_v36 = vld [vmem:[#allocation7 + $0x60] sm:$0xff]  ;;  %v168_v37 = vld [vmem:[#allocation7 + $0x58] sm:$0xff] }
  0x1b   :  { %101 = vmatpush.msra.mxu0 %v84_v10  ;;  %v167_v38 = vld [vmem:[#allocation7 + $0x50] sm:$0xff]  ;;  %v166_v39 = vld [vmem:[#allocation7 + $0x48] sm:$0xff]  ;;  %v165_v40 = vld [vmem:[#allocation7 + $0x40] sm:$0xff] }
  0x1c   :  { %142 = vmatpush.msra.mxu1 %v125_v15  ;;  %178 = vmatpush.msra.mxu2 %v171_v34  ;;  %v164_v41 = vld [vmem:[#allocation7 + $0x38] sm:$0xff]  ;;  %v163_v42 = vld [vmem:[#allocation7 + $0x30] sm:$0xff]  ;;  %v162_v43 = vld [vmem:[#allocation7 + $0x28] sm:$0xff] }
  0x1d   :  { %102 = vmatpush.msra.mxu0 %v83_v12  ;;  %v161_v44 = vld [vmem:[#allocation7 + $0x20] sm:$0xff]  ;;  %v160_v45 = vld [vmem:[#allocation7 + $0x18] sm:$0xff]  ;;  %v159_v50 = vld [vmem:[#allocation7 + $0x10] sm:$0xff] }
  0x1e   :  { %143 = vmatpush.msra.mxu1 %v124_v17  ;;  %179 = vmatpush.msra.mxu2 %v170_v35  ;;  %v242_v46 = vld [vmem:[%s423_s2] ss:$0 sm:$0xff]  ;;  %v158_v51 = vld [vmem:[#allocation7 + $0x8] sm:$0xff] }
  0x1f   :  { %103 = vmatpush.msra.mxu0 %v82_v14  ;;  %v157_v52 = vld [vmem:[#allocation7] sm:$0xff] }
  0x20   :  { %144 = vmatpush.msra.mxu1 %v123_v19  ;;  %180 = vmatpush.msra.mxu2 %v169_v36  ;;  %v243_v53 = vld [vmem:[%s425_s4] ss:$0 sm:$0xff]  ;;  %s356_s4 = smov [#allocation8]  }
  0x21   :  { %104 = vmatpush.msra.mxu0 %v81_v16  ;;  %v244_v57 = vld [vmem:[%s427_s6] ss:$0 sm:$0xff]  ;;  %s222_s21 = sshll.u32 %s356_s4, 4  ;;  %s224_s6 = sshll.u32 %s428_s7, 4  ;;  %s223_s21 = int_to_ptr.vmem [resolvable:$true] %s222_s21  ;;  %s225_s6 = int_to_ptr.hbm [resolvable:$true] %s224_s6 }
  0x22   :  { %145 = vmatpush.msra.mxu1 %v122_v21  ;;  %181 = vmatpush.msra.mxu2 %v168_v37 }
  0x23   :  { %105 = vmatpush.msra.mxu0 %v80_v18 }
  0x24   :  { %146 = vmatpush.msra.mxu1 %v121_v23  ;;  %182 = vmatpush.msra.mxu2 %v167_v38 }
  0x25   :  { %106 = vmatpush.msra.mxu0 %v79_v20 }
  0x26   :  { %147 = vmatpush.msra.mxu1 %v120_v25  ;;  %183 = vmatpush.msra.mxu2 %v166_v39 }
  0x27   :  { %107 = vmatpush.msra.mxu0 %v78_v22 }
  0x28   :  { %148 = vmatpush.msra.mxu1 %v119_v27  ;;  %184 = vmatpush.msra.mxu2 %v165_v40 }
  0x29   :  { %108 = vmatpush.msra.mxu0 %v77_v24 }
  0x2a   :  { %149 = vmatpush.msra.mxu1 %v118_v30  ;;  %185 = vmatpush.msra.mxu2 %v164_v41 }
  0x2b   :  { %109 = vmatpush.msra.mxu0 %v76_v26 }
  0x2c   :  { %150 = vmatpush.msra.mxu1 %v117_v31  ;;  %186 = vmatpush.msra.mxu2 %v163_v42 }
  0x2d   :  { %110 = vmatpush.msra.mxu0 %v75_v28 }
  0x2e   :  { %111 = vmatmul.f32.vlgmr.msra.gmra.mxu0 %v74_v29  ;;  %151 = vmatpush.msra.mxu1 %v116_v32 }
  0x2f   :  { %187 = vmatpush.msra.mxu2 %v162_v43 }
  0x31   :  { %188 = vmatpush.msra.mxu2 %v161_v44 }
  0x33   :  { %189 = vmatpush.msra.mxu2 %v160_v45 }
  0x35   :  { %190 = vmatpush.msra.mxu2 %v159_v50 }
  0x37   :  { %191 = vmatpush.msra.mxu2 %v158_v51 }
  0x39   :  { %192 = vmatpush.msra.mxu2 %v157_v52 }
  0xab   :  { %v112_v47 = vpop.f32.mrf.mxu0 }
  0xac   :  { %v113_v48 = vadd.f32 %v242_v46, %v112_v47 }
  0xae   :  { %v115_v49 = vmax.f32 %v113_v48, 0.0 }
  0xb0   :  { %152 = vmatmul.f32.vlgmr.msra.gmra.mxu1 %v115_v49 }
 0x12d   :  { %v153_v54 = vpop.f32.mrf.mxu1 }
 0x12e   :  { %v154_v55 = vadd.f32 %v243_v53, %v153_v54 }
 0x130   :  { %v156_v56 = vmax.f32 %v154_v55, 0.0 }
 0x132   :  { %193 = vmatmul.f32.vlgmr.msra.gmra.mxu2 %v156_v56 }
 0x1b5   :  { %v194_v58 = vpop.f32.mrf.mxu2 }
 0x1b6   :  { %v195_v59 = vadd.f32 %v244_v57, %v194_v58 }
 0x1b8   :  { %v235_v60 = vmul.f32 -1.442695, %v195_v59 }
 0x1ba   :  { %245 = vpow2.f32 %v235_v60 }
 0x1c0   :  { %v246_v61 = vpop.eup %245 }
 0x1c1   :  { %v200_v62 = vadd.f32 1.0, %v246_v61 }
 0x1c3   :  { %247 = vrcp.f32 %v200_v62  ;;  %v212_v2 = vand.u32 2147483648, %v200_v62  ;;  %v210_v4 = vand.u32 2147483647, %v200_v62  ;;  %vm206_vm1 = vweird.f32 %v200_v62 }
 0x1c5   :  { %v213_v6 = vor.u32 1.1754944e-38, %v212_v2  ;;  %vm211_vm3 = vcmp.eq.f32.partialorder %v210_v4, 8.507059e+37 }
 0x1c9   :  { %v248_v63 = vpop.eup %247 }
 0x1ca   :  { %v202_v0 = vmul.f32 %v248_v63, %v200_v62  ;;  %vm207_vm0 = vweird.f32 %v248_v63 }
 0x1cb   :  { %vm208_vm2 = vmor %vm206_vm1, %vm207_vm0 }
 0x1cc   :  { %v203_v1 = vsub.f32 1.0, %v202_v0 }
 0x1ce   :  { %v204_v3 = vmul.f32 %v248_v63, %v203_v1 }
 0x1d0   :  { %v205_v5 = vadd.f32 %v248_v63, %v204_v3 }
 0x1d2   :  { %v209_v7 = vsel %vm208_vm2, %v248_v63, %v205_v5 }
 0x1d3   :  { %v214_v8 = vsel %vm211_vm3, %v213_v6, %v209_v7 }
 0x1d4   :  { %216 = vst [vmem:[#allocation8] sm:$0xff] %v214_v8 }
 0x1d5   :  { %227 = dma.vmem_to_hbm [thread:$0]  %s223_s21, 128, %s225_s6, [#allocation4]  }
 0x1d6   :  { %349 = dma.done.wait [#allocation4], 128  }
 0x1d7   :  { %350 = vsyncadd [#allocation4], 4294967168 }
 0x1d8   :  { %232 = vsyncpa [#allocation3], 1 }
 0x1d9   :  { %233 = vsyncpa [#allocation6], 1 }
 0x1da   :  { %234 = vsyncpa [#allocation4], 1 }

</bundles_post_ra>
